<compile_context>
chip_gen: v6e
topology: v6e:2x2x1
jax: 0.10.0
libtpu: 0.0.40
codegen_flags: <defaults>
</compile_context>

<pallas_src>
import math

import jax
import jax.numpy as jnp
from jax.experimental import pallas as pl
from jax.experimental.pallas import tpu as pltpu


# ~2 MiB per block: near the HBM-roofline plateau while keeping the
# double-buffered footprint (3 operands x 2 buffers) small on all generations
# (binding budget is v7x: 32 MiB scoped default / 64 MiB physical VMEM).
_TARGET_BLOCK_BYTES = 2 * 1024 * 1024


def _build_encoding_table(d_model: int, max_len: int = 5000, dtype=jnp.float32):
    """Deterministic sinusoidal table, identical formula to the PyTorch module."""
    position = jnp.arange(0, max_len, dtype=jnp.float32)[:, None]            # (max_len, 1)
    div_term = jnp.exp(
        jnp.arange(0, d_model, 2, dtype=jnp.float32) * (-math.log(10000.0) / d_model)
    )                                                                         # (ceil(D/2),)
    angles = position * div_term                                              # (max_len, ceil(D/2))
    enc = jnp.zeros((max_len, d_model), dtype=jnp.float32)
    enc = enc.at[:, 0::2].set(jnp.sin(angles))
    enc = enc.at[:, 1::2].set(jnp.cos(angles)[:, : d_model // 2])
    return enc.astype(dtype)                                                  # (max_len, d_model)


def _pick_tile(n: int, align: int, max_tile: int) -> int:
    """Tile size for an axis of length n.

    Prefers (in order): the whole axis if it fits `max_tile`, the largest
    divisor of n that is a multiple of `align` and <= max_tile, else
    `max_tile` itself (ragged edge handled by Pallas block padding).
    """
    max_tile = max(align, (max_tile // align) * align)
    if n <= max_tile:
        return n
    best = 0
    d = align
    while d <= max_tile:
        if n % d == 0:
            best = d
        d += align
    return best if best else max_tile


def _pe_add_3d_kernel(x_ref, pe_ref, o_ref):
    # x: (1, tS, D), pe: (tS, D) -> broadcast add over the leading batch dim.
    x = x_ref[...].astype(jnp.float32)
    pe = pe_ref[...].astype(jnp.float32)[None, :, :]
    o_ref[...] = (x + pe).astype(o_ref.dtype)


def _pe_add_2d_kernel(x_ref, pe_ref, o_ref):
    # x: (tB, tC) flattened rows, pe: (1, tC) -> broadcast add over batch rows.
    x = x_ref[...].astype(jnp.float32)
    pe = pe_ref[...].astype(jnp.float32)
    o_ref[...] = (x + pe).astype(o_ref.dtype)


def positional_encoding_forward(x: jax.Array, encoding_table: jax.Array) -> jax.Array:
    """Equivalent of PositionalEncoding.forward: x + encoding[:x.shape[1]]."""
    B, S, D = x.shape
    max_len, d_table = encoding_table.shape
    if d_table != D:
        raise ValueError(f"encoding table d_model {d_table} != input d_model {D}")
    if S > max_len:
        raise ValueError(f"sequence length {S} exceeds max_len {max_len}")

    itemsize = jnp.dtype(x.dtype).itemsize
    # Sublane packing: f32 -> 8, bf16 -> 16, int8/fp8 -> 32 rows.
    sublane_align = max(8, 32 // itemsize)
    target_elems = max(128, _TARGET_BLOCK_BYTES // itemsize)

    # Cast the PE operand once in the wrapper when x is a narrower float type:
    # halves (bf16) / quarters (fp8) the PE DMA bytes + VMEM footprint.  The
    # in-kernel add still accumulates in f32.  Non-float x keeps an f32 table.
    if jnp.issubdtype(x.dtype, jnp.floating) and itemsize < 4:
        pe_table = encoding_table.astype(x.dtype)
    else:
        pe_table = encoding_table

    # Outer axis (sequence / flattened-column tiles) is megacore-parallel; the
    # inner batch axis is "arbitrary" so each core sweeps consecutive batch
    # steps with a constant PE block index -> Pallas skips the redundant DMA.
    compiler_params = pltpu.CompilerParams(
        dimension_semantics=("parallel", "arbitrary"),
        vmem_limit_bytes=32 * 1024 * 1024,
    )

    if D % 128 == 0:
        # ---- Path A: lane-dense 3-D tiling, grid = (seq tiles, batch). ----
        max_rows = max(sublane_align, target_elems // D)
        aligned = (S % sublane_align == 0)
        if aligned or S <= max_rows:
            if aligned:
                tS = _pick_tile(S, sublane_align, max_rows)
                pe_a = pe_table            # BlockSpec slices (tS, D) out of the full table
            else:
                tS = S                     # block dim == full dim is always legal
                pe_a = pe_table[:S, :]     # small slice keeps the PE block shape legal
            grid = (pl.cdiv(S, tS), B)     # batch innermost: PE tile DMA'd once per seq tile
            return pl.pallas_call(
                _pe_add_3d_kernel,
                out_shape=jax.ShapeDtypeStruct((B, S, D), x.dtype),
                grid=grid,
                in_specs=[
                    pl.BlockSpec((1, tS, D), lambda s, b: (b, s, 0)),   # x tile
                    pl.BlockSpec((tS, D), lambda s, b: (s, 0)),         # PE tile (b-invariant)
                ],
                out_specs=pl.BlockSpec((1, tS, D), lambda s, b: (b, s, 0)),
                compiler_params=compiler_params,
            )(x, pe_a)

    # ---- Path B: flatten to (B, S*D) so the output's last dim is lane-dense. ----
    F = S * D
    x2 = x.reshape(B, F)
    # TODO(synk): for static S in a tight decode loop, hoist this flattened PE
    # row out of the per-call wrapper (it is an S*D-element slice+reshape).
    pe2 = pe_table[:S, :].reshape(1, F)

    # Batch tile: full B when small (full-dim block is always legal), otherwise
    # a sublane-aligned tile with a ragged cdiv edge (keeps blocks ~2 MiB and
    # well pipelined even for large / odd B).
    tB = B if B <= sublane_align else sublane_align
    max_cols = max(128, target_elems // max(tB, 1))
    tC = _pick_tile(F, 128, max_cols)
    grid = (pl.cdiv(F, tC), pl.cdiv(B, tB))   # batch innermost: PE row DMA'd once per col tile

    out2 = pl.pallas_call(
        _pe_add_2d_kernel,
        out_shape=jax.ShapeDtypeStruct((B, F), x.dtype),
        grid=grid,
        in_specs=[
            pl.BlockSpec((tB, tC), lambda c, i: (i, c)),   # x rows
            pl.BlockSpec((1, tC), lambda c, i: (0, c)),    # flattened PE row (i-invariant)
        ],
        out_specs=pl.BlockSpec((tB, tC), lambda c, i: (i, c)),
        compiler_params=compiler_params,
    )(x2, pe2)
    return out2.reshape(B, S, D)


if __name__ == "__main__":
    MAX_LEN = 5000
    key = jax.random.PRNGKey(0)
    k1, k2, k3 = jax.random.split(key, 3)

    # Primary demo shape (lane-sparse D=32 -> flattened lane-dense 2-D path).
    B, S, D = 2, 8, 32
    x = jax.random.normal(k1, (B, S, D), dtype=jnp.float32)
    table = _build_encoding_table(d_model=D, max_len=MAX_LEN)
    out = jax.block_until_ready(positional_encoding_forward(x, table))
    ref = x + table[:S, :][None, :, :]
    assert out.shape == (B, S, D)
    assert jnp.allclose(out, ref, atol=1e-6, rtol=1e-6), "mismatch vs reference (2D path)"

    # Second small shape exercising the lane-dense 3-D path (D % 128 == 0).
    B2, S2, D2 = 2, 16, 128
    x2 = jax.random.normal(k2, (B2, S2, D2), dtype=jnp.float32)
    table2 = _build_encoding_table(d_model=D2, max_len=MAX_LEN)
    out2 = jax.block_until_ready(positional_encoding_forward(x2, table2))
    ref2 = x2 + table2[:S2, :][None, :, :]
    assert out2.shape == (B2, S2, D2)
    assert jnp.allclose(out2, ref2, atol=1e-6, rtol=1e-6), "mismatch vs reference (3D path)"

    # Third check: bf16 input exercises the wrapper-side PE dtype cast.
    B3, S3, D3 = 2, 16, 128
    x3 = jax.random.normal(k3, (B3, S3, D3), dtype=jnp.float32).astype(jnp.bfloat16)
    table3 = _build_encoding_table(d_model=D3, max_len=MAX_LEN)
    out3 = jax.block_until_ready(positional_encoding_forward(x3, table3))
    ref3 = (
        x3.astype(jnp.float32)
        + table3[:S3, :].astype(jnp.bfloat16).astype(jnp.float32)[None, :, :]
    ).astype(jnp.bfloat16)
    assert out3.shape == (B3, S3, D3)
    assert jnp.allclose(
        out3.astype(jnp.float32), ref3.astype(jnp.float32), atol=2e-2, rtol=2e-2
    ), "mismatch vs reference (bf16 path)"

    print("KERNEL_OK")
</pallas_src>

<mosaic_0001>
module attributes {stable_mosaic.version = 11 : i64} {
  func.func @_pe_add_2d_kernel(%arg0: i32, %arg1: i32, %arg2: memref<2x256xf32, #tpu.memory_space<vmem>>, %arg3: memref<1x256xf32, #tpu.memory_space<vmem>>, %arg4: memref<2x256xf32, #tpu.memory_space<vmem>>) attributes {dimension_semantics = [#tpu.dimension_semantics<parallel>, #tpu.dimension_semantics<arbitrary>], iteration_bounds = array<i64: 1, 1>, scalar_prefetch = 0 : i64, scratch_operands = 0 : i64, tpu.core_type = #tpu.core_type<tc>, window_params = [{transform_indices = @transform_0, window_bounds = array<i64: 2, 256>}, {transform_indices = @transform_1, window_bounds = array<i64: 1, 256>}, {transform_indices = @transform_2, window_bounds = array<i64: 2, 256>}]} {
    %c0 = arith.constant 0 : index
    %c0_0 = arith.constant 0 : index
    %0 = vector.load %arg2[%c0, %c0_0] : memref<2x256xf32, #tpu.memory_space<vmem>>, vector<2x256xf32>
    %c0_1 = arith.constant 0 : index
    %c0_2 = arith.constant 0 : index
    %1 = vector.load %arg3[%c0_1, %c0_2] : memref<1x256xf32, #tpu.memory_space<vmem>>, vector<1x256xf32>
    %2 = vector.broadcast %1 : vector<1x256xf32> to vector<2x256xf32>
    %3 = arith.addf %0, %2 : vector<2x256xf32>
    %c0_3 = arith.constant 0 : index
    %c0_4 = arith.constant 0 : index
    %4 = vector.load %arg4[%c0_3, %c0_4] : memref<2x256xf32, #tpu.memory_space<vmem>>, vector<2x256xf32>
    tpu.vector_store %arg4[%c0_3, %c0_4], %3 {strides = array<i32>} : memref<2x256xf32, #tpu.memory_space<vmem>>, vector<2x256xf32>,
    return
  }
  func.func @transform_0(%arg0: i32, %arg1: i32) -> (i32, i32) {
    %c0_i32 = arith.constant 0 : i32
    return %arg1, %arg0 : i32, i32
  }
  func.func @transform_1(%arg0: i32, %arg1: i32) -> (i32, i32) {
    %c0_i32 = arith.constant 0 : i32
    %c0_i32_0 = arith.constant 0 : i32
    return %c0_i32, %arg0 : i32, i32
  }
  func.func @transform_2(%arg0: i32, %arg1: i32) -> (i32, i32) {
    %c0_i32 = arith.constant 0 : i32
    return %arg1, %arg0 : i32, i32
  }
}

</mosaic_0001>

<bundles_post_ra>
// kernel: tpu_custom_call.1
= control target key start
LH: loop header
LB: loop body
LE: loop exit
PB: predicated region body
PF: predicated region fallthrough
CT: control target
= control target key end

     0   :  { %7 = vsyncpa [#allocation3], 0  ;;  %s172_s0 = inlined_call_operand.hbm [shape: f32[2,256], index: 0, kind: input, shape index: {}]   ;;  %s173_s1 = inlined_call_operand.hbm [shape: f32[1,256], index: 1, kind: input, shape index: {}]   ;;  %s174_s2 = inlined_call_operand.hbm [shape: f32[2,256], index: 2, kind: output, shape index: {}]  }
   0x1   :  { %8 = vsyncpa [#allocation6], 0 }
   0x2   :  { %9 = vsyncpa [#allocation4], 0  ;;  %s144_s9 = smov [#allocation2]   ;;  %s145_s11 = smov [#allocation5]  }
   0x3   :  { %s16_s10 = sshll.u32 %s144_s9, 4  ;;  %s26_s12 = sshll.u32 %s145_s11, 4  ;;  %s17_s10 = int_to_ptr.vmem [resolvable:$true] %s16_s10  ;;  %s27_s12 = int_to_ptr.vmem [resolvable:$true] %s26_s12 }
   0x4   :  { %s86_s13 = scalar_lea.vmem %s17_s10, 64  ;;  %p91_p1 = scmp.lt.s32.totalorder %s17_s10, %s17_s10 }
   0x5   :  { %p87_p0 = scmp.ne.s32.totalorder %s17_s10, %s86_s13  ;;  %p92_p2 = scmp.lt.s32.totalorder %s86_s13, %s86_s13 }
   0x7   :  { %p93_p3 = por %p92_p2, %p91_p1 }
   0x9   :  { %p94_p4 = pnand %p93_p3, %p87_p0 }
   0xb   :  { %97 = shalt.err (!%p94_p4)
}
   0xc   :  { %19 = dma.hbm_to_vmem [thread:$0]  %s172_s0, 64, %s17_s10, [#allocation3]  }
   0xd   :  { %s106_s16 = scalar_lea.vmem %s27_s12, 32  ;;  %p111_p6 = scmp.lt.s32.totalorder %s27_s12, %s27_s12 }
   0xe   :  { %p107_p5 = scmp.ne.s32.totalorder %s27_s12, %s106_s16  ;;  %p112_p7 = scmp.lt.s32.totalorder %s106_s16, %s106_s16 }
  0x10   :  { %p113_p8 = por %p112_p7, %p111_p6 }
  0x12   :  { %p114_p9 = pnand %p113_p8, %p107_p5 }
  0x14   :  { %117 = shalt.err (!%p114_p9)
}
  0x15   :  { %29 = dma.hbm_to_vmem [thread:$0]  %s173_s1, 32, %s27_s12, [#allocation6]  }
  0x16   :  { %138 = dma.done.wait [#allocation3], 64  }
  0x17   :  { %139 = vsyncadd [#allocation3], 4294967232 }
  0x18   :  { %140 = dma.done.wait [#allocation6], 32  }
  0x19   :  { %141 = vsyncadd [#allocation6], 4294967264  ;;  %v39_v0 = vlaneseq  ;;  %v146_v1 = vmov 1983009808   ;;  %v37_v7 = vld [vmem:[#allocation5] sm:$0x3] }
  0x1a   :  { %v49_v2 = vunpack.c.l.s4 %v146_v1  ;;  %v36_v12 = vld [vmem:[#allocation2] sm:$0xf]  ;;  %s147_s0 = smov [#allocation7]  }
  0x1b   :  { %v40_v3 = vshrl.u32 %v39_v0, 7  ;;  %s64_s19 = sshll.u32 %s147_s0, 4  ;;  %s65_s19 = int_to_ptr.vmem [resolvable:$true] %s64_s19 }
  0x1c   :  { %v50_v6 = vunpack.c.0.s8 %v49_v2  ;;  %s118_s1 = scalar_lea.vmem %s65_s19, 64  ;;  %p123_p11 = scmp.lt.s32.totalorder %s65_s19, %s65_s19 }
  0x1d   :  { %v41_v4 = vsub.s32 0, %v40_v3  ;;  %v45_v5 = vsub.s32 1, %v40_v3  ;;  %p119_p10 = scmp.ne.s32.totalorder %s65_s19, %s118_s1  ;;  %p124_p12 = scmp.lt.s32.totalorder %s118_s1, %s118_s1 }
  0x1e   :  { %v53_v10 = vsub.s32 %v50_v6, %v40_v3 }
  0x1f   :  { %v42_v8 = vrot.slane %v37_v7, %v41_v4  ;;  %v46_v9 = vrot.slane %v37_v7, %v45_v5  ;;  %p125_p13 = por %p124_p12, %p123_p11 }
  0x21   :  { %v47_v11 = vcombine.low %v42_v8, %v46_v9  ;;  %p126_p0 = pnand %p125_p13, %p119_p10 }
  0x23   :  { %v54_v13 = vrot.slane %v47_v11, %v53_v10 }
  0x25   :  { %v56_v14 = vadd.f32 %v54_v13, %v36_v12 }
  0x27   :  { %57 = vst [vmem:[#allocation7] sm:$0xf] %v56_v14 }
  0x28   :  { %129 = shalt.err (!%p126_p0)
}
  0x29   :  { %67 = dma.vmem_to_hbm [thread:$0]  %s65_s19, 64, %s174_s2, [#allocation4]  }
  0x2a   :  { %142 = dma.done.wait [#allocation4], 64  }
  0x2b   :  { %143 = vsyncadd [#allocation4], 4294967232 }
  0x2c   :  { %71 = vsyncpa [#allocation3], 1 }
  0x2d   :  { %72 = vsyncpa [#allocation6], 1 }
  0x2e   :  { %73 = vsyncpa [#allocation4], 1 }

</bundles_post_ra>
